<compile_context>
chip_gen: v5e
topology: v5e:2x2
jax: 0.10.0
libtpu: 0.0.40
codegen_flags: <defaults>
</compile_context>

<pallas_src>
import functools
import math

import jax
import jax.numpy as jnp
from jax.experimental import pallas as pl
from jax.experimental.pallas import tpu as pltpu


# ----------------------------------------------------------------------------
# Pallas kernel: SE forward for one batch tile.
# ----------------------------------------------------------------------------
def _se_kernel(x_ref, w1t_ref, b1_ref, w2t_ref, b2_ref, o_ref, *,
               channels, pixels):
    """
    x_ref  : (NB, C*P)  image rows on sublanes, channel-major pixels on lanes
    w1t_ref: (C, Cse)   se1 weight, pre-transposed to (in, out)
    b1_ref : (1, Cse)
    w2t_ref: (Cse, C)   se2 weight, pre-transposed to (in, out)
    b2_ref : (1, C)
    o_ref  : (NB, C*P)
    """
    C, P = channels, pixels

    # ---- squeeze: adaptive_avg_pool2d(x, 1) == per-(image, channel) mean.
    # Each channel is a contiguous, 128-aligned lane slab of width P, so the
    # pooling is a static lane slice + lane reduce; x is consumed slab by
    # slab (narrow live ranges, no big live tile).
    pooled = jnp.concatenate(
        [jnp.mean(x_ref[:, c * P:(c + 1) * P], axis=-1, keepdims=True)
         for c in range(C)],
        axis=1)                                                     # (NB, C)

    # ---- excite: two tiny 1x1-conv FCs on the MXU (f32 accumulation).
    h = jnp.dot(pooled, w1t_ref[...],
                preferred_element_type=jnp.float32) + b1_ref[...]   # (NB, Cse)
    h = h * jax.nn.sigmoid(h)                                       # swish
    g = jnp.dot(h, w2t_ref[...],
                preferred_element_type=jnp.float32) + b2_ref[...]   # (NB, C)
    g = jax.nn.sigmoid(g)                                           # gate

    # ---- scale: o = x * gate.  Re-read x_ref per channel slab; every store
    # is a wide, 128-aligned, unmasked vst.
    for c in range(C):
        sl = slice(c * P, (c + 1) * P)
        o_ref[:, sl] = (x_ref[:, sl] * g[:, c:c + 1]).astype(o_ref.dtype)


# ----------------------------------------------------------------------------
# Block-size selection (HBM-roofline / VMEM / megacore aware).
# ----------------------------------------------------------------------------
def _choose_batch_tile(n, row_bytes, *, target_bytes=2 << 20, min_blocks=8):
    """Images per grid step.

    Targets ~2 MiB blocks (near the measured ~85%-of-HBM-BW plateau; 4x
    double-buffered in+out stays under v5e's 16 MiB scoped-VMEM default and
    easily under v7x's 64 MiB), while keeping >= min_blocks grid steps for
    large batches so v7x's two TensorCores both get work.  Block rows are a
    multiple of 8 (or equal to the full batch) for the (8, 128) constraint.
    """
    if n <= 8:
        return n
    cap = max(1, target_bytes // row_bytes)     # rows per ~2 MiB block
    split = max(1, n // min_blocks)             # rows if we want >=min_blocks steps
    return max(8, (min(cap, split) // 8) * 8)


# ----------------------------------------------------------------------------
# Wrapper: NCHW in -> NCHW out.  No pads, no slices, no transposes.
# ----------------------------------------------------------------------------
def se_forward(x_nchw, params, *, batch_tile=None):
    N, C, H, W = x_nchw.shape
    P = H * W
    CP = C * P
    Cse = params["w1"].shape[0]
    assert params["w1"].shape == (Cse, C)
    assert params["w2"].shape == (C, Cse)

    # Contiguous NCHW viewed as (N, C*H*W): free reshape, lane-dense rows.
    x = x_nchw.reshape(N, CP)

    row_bytes = CP * x.dtype.itemsize
    NB = batch_tile if batch_tile is not None else _choose_batch_tile(N, row_bytes)
    n_blocks = pl.cdiv(N, NB)   # ragged tail handled by Pallas block masking

    # Pre-transposed weights / row-shaped biases so the kernel needs no
    # in-kernel transposes or relayouts.
    w1t = params["w1"].T                 # (C, Cse)
    b1 = params["b1"].reshape(1, Cse)
    w2t = params["w2"].T                 # (Cse, C)
    b2 = params["b2"].reshape(1, C)

    def rep(shape):                      # replicated (full) parameter block
        return pl.BlockSpec(shape, lambda i: (0, 0))

    kernel = functools.partial(_se_kernel, channels=C, pixels=P)

    grid_spec = pltpu.PrefetchScalarGridSpec(
        num_scalar_prefetch=0,
        grid=(n_blocks,),
        in_specs=[pl.BlockSpec((NB, CP), lambda i: (i, 0)),
                  rep(w1t.shape), rep(b1.shape), rep(w2t.shape), rep(b2.shape)],
        out_specs=pl.BlockSpec((NB, CP), lambda i: (i, 0)),
    )

    out = pl.pallas_call(
        kernel,
        out_shape=jax.ShapeDtypeStruct((N, CP), x.dtype),
        grid_spec=grid_spec,
        compiler_params=pltpu.CompilerParams(
            dimension_semantics=("parallel",)),
    )(x, w1t, b1, w2t, b2)

    return out.reshape(N, C, H, W)       # free reshape back to NCHW


# ----------------------------------------------------------------------------
# Deterministic parameter init (torch Conv2d 1x1 weights, squeezed).
# ----------------------------------------------------------------------------
def init_se_params(key, in_channels, se_channels):
    C, Cse = in_channels, se_channels
    k1, k2, k3, k4 = jax.random.split(key, 4)
    return {
        # se1: torch weight (Cse, C, 1, 1) -> (Cse, C); bias (Cse,)
        "w1": jax.random.normal(k1, (Cse, C), jnp.float32) / math.sqrt(C),
        "b1": 0.1 * jax.random.normal(k2, (Cse,), jnp.float32),
        # se2: torch weight (C, Cse, 1, 1) -> (C, Cse); bias (C,)
        "w2": jax.random.normal(k3, (C, Cse), jnp.float32) / math.sqrt(Cse),
        "b2": 0.1 * jax.random.normal(k4, (C,), jnp.float32),
    }


# ----------------------------------------------------------------------------
# Pure-JAX reference for verification (full f32 precision).
# ----------------------------------------------------------------------------
def reference_forward(x_nchw, p):
    HIGH = jax.lax.Precision.HIGHEST
    pooled = jnp.mean(x_nchw, axis=(2, 3))                           # (N, C)
    h = jnp.dot(pooled, p["w1"].T, precision=HIGH) + p["b1"]         # (N, Cse)
    h = h * jax.nn.sigmoid(h)                                        # swish
    g = jnp.dot(h, p["w2"].T, precision=HIGH) + p["b2"]              # (N, C)
    g = jax.nn.sigmoid(g)
    return x_nchw * g[:, :, None, None]


# ----------------------------------------------------------------------------
if __name__ == "__main__":
    # Small config consistent with the module: SE(in_channels=4, se_channels=8)
    # on a 2 x 4 x 16 x 16 NCHW input.
    N, C, H, W = 2, 4, 16, 16
    Cse = 8

    key = jax.random.PRNGKey(0)
    kx, kp = jax.random.split(key)
    x = jax.random.normal(kx, (N, C, H, W), jnp.float32)
    params = init_se_params(kp, C, Cse)

    fwd = jax.jit(se_forward)
    out = jax.block_until_ready(fwd(x, params))

    ref = jax.block_until_ready(reference_forward(x, params))
    assert out.shape == ref.shape == (N, C, H, W)
    max_err = float(jnp.max(jnp.abs(out - ref)))
    assert jnp.allclose(out, ref, atol=1e-4, rtol=1e-4), max_err

    print("KERNEL_OK")
</pallas_src>

<mosaic_0001>
module attributes {stable_mosaic.version = 11 : i64} {
  func.func @_se_kernel(%arg0: i32, %arg1: memref<2x1024xf32, #tpu.memory_space<vmem>>, %arg2: memref<4x8xf32, #tpu.memory_space<vmem>>, %arg3: memref<1x8xf32, #tpu.memory_space<vmem>>, %arg4: memref<8x4xf32, #tpu.memory_space<vmem>>, %arg5: memref<1x4xf32, #tpu.memory_space<vmem>>, %arg6: memref<2x1024xf32, #tpu.memory_space<vmem>>) attributes {dimension_semantics = [#tpu.dimension_semantics<parallel>], iteration_bounds = array<i64: 1>, scalar_prefetch = 0 : i64, scratch_operands = 0 : i64, tpu.core_type = #tpu.core_type<tc>, window_params = [{transform_indices = @transform_0, window_bounds = array<i64: 2, 1024>}, {pipeline_mode = #tpu.pipeline_mode<synchronous>, transform_indices = @transform_1, window_bounds = array<i64: 4, 8>}, {pipeline_mode = #tpu.pipeline_mode<synchronous>, transform_indices = @transform_2, window_bounds = array<i64: 1, 8>}, {pipeline_mode = #tpu.pipeline_mode<synchronous>, transform_indices = @transform_3, window_bounds = array<i64: 8, 4>}, {pipeline_mode = #tpu.pipeline_mode<synchronous>, transform_indices = @transform_4, window_bounds = array<i64: 1, 4>}, {transform_indices = @transform_5, window_bounds = array<i64: 2, 1024>}]} {
    %c0 = arith.constant 0 : index
    %c0_0 = arith.constant 0 : index
    %0 = vector.load %arg1[%c0, %c0_0] : memref<2x1024xf32, #tpu.memory_space<vmem>>, vector<2x256xf32>
    %cst = arith.constant dense<0.000000e+00> : vector<2xf32>
    %1 = vector.multi_reduction <add>, %0, %cst [1] : vector<2x256xf32> to vector<2xf32>
    %2 = vector.shape_cast %1 : vector<2xf32> to vector<2x1xf32>
    %cst_1 = arith.constant 2.560000e+02 : f32
    %3 = vector.broadcast %cst_1 : f32 to vector<2x1xf32>
    %4 = arith.divf %2, %3 : vector<2x1xf32>
    %c0_2 = arith.constant 0 : index
    %c256 = arith.constant 256 : index
    %5 = vector.load %arg1[%c0_2, %c256] : memref<2x1024xf32, #tpu.memory_space<vmem>>, vector<2x256xf32>
    %cst_3 = arith.constant dense<0.000000e+00> : vector<2xf32>
    %6 = vector.multi_reduction <add>, %5, %cst_3 [1] : vector<2x256xf32> to vector<2xf32>
    %7 = vector.shape_cast %6 : vector<2xf32> to vector<2x1xf32>
    %cst_4 = arith.constant 2.560000e+02 : f32
    %8 = vector.broadcast %cst_4 : f32 to vector<2x1xf32>
    %9 = arith.divf %7, %8 : vector<2x1xf32>
    %c0_5 = arith.constant 0 : index
    %c512 = arith.constant 512 : index
    %10 = vector.load %arg1[%c0_5, %c512] : memref<2x1024xf32, #tpu.memory_space<vmem>>, vector<2x256xf32>
    %cst_6 = arith.constant dense<0.000000e+00> : vector<2xf32>
    %11 = vector.multi_reduction <add>, %10, %cst_6 [1] : vector<2x256xf32> to vector<2xf32>
    %12 = vector.shape_cast %11 : vector<2xf32> to vector<2x1xf32>
    %cst_7 = arith.constant 2.560000e+02 : f32
    %13 = vector.broadcast %cst_7 : f32 to vector<2x1xf32>
    %14 = arith.divf %12, %13 : vector<2x1xf32>
    %c0_8 = arith.constant 0 : index
    %c768 = arith.constant 768 : index
    %15 = vector.load %arg1[%c0_8, %c768] : memref<2x1024xf32, #tpu.memory_space<vmem>>, vector<2x256xf32>
    %cst_9 = arith.constant dense<0.000000e+00> : vector<2xf32>
    %16 = vector.multi_reduction <add>, %15, %cst_9 [1] : vector<2x256xf32> to vector<2xf32>
    %17 = vector.shape_cast %16 : vector<2xf32> to vector<2x1xf32>
    %cst_10 = arith.constant 2.560000e+02 : f32
    %18 = vector.broadcast %cst_10 : f32 to vector<2x1xf32>
    %19 = arith.divf %17, %18 : vector<2x1xf32>
    %20 = tpu.concatenate %4, %9, %14, %19 in 1 : vector<2x1xf32>, vector<2x1xf32>, vector<2x1xf32>, vector<2x1xf32> -> vector<2x4xf32>
    %c0_11 = arith.constant 0 : index
    %c0_12 = arith.constant 0 : index
    %21 = vector.load %arg2[%c0_11, %c0_12] : memref<4x8xf32, #tpu.memory_space<vmem>>, vector<4x8xf32>
    %cst_13 = arith.constant dense<0.000000e+00> : vector<2x8xf32>
    %22 = tpu.matmul %20, %21, %cst_13 {dimension_numbers = #tpu.dot_dimension_numbers<[1], [0], [0], [1], [0, 0, 1, 1], [], []>} : vector<2x4xf32>, vector<4x8xf32>, vector<2x8xf32> -> vector<2x8xf32>
    %c0_14 = arith.constant 0 : index
    %c0_15 = arith.constant 0 : index
    %23 = vector.load %arg3[%c0_14, %c0_15] : memref<1x8xf32, #tpu.memory_space<vmem>>, vector<1x8xf32>
    %24 = vector.broadcast %23 : vector<1x8xf32> to vector<2x8xf32>
    %25 = arith.addf %22, %24 : vector<2x8xf32>
    %26 = arith.negf %25 : vector<2x8xf32>
    %27 = math.exp %26 : vector<2x8xf32>
    %cst_16 = arith.constant 1.000000e+00 : f32
    %28 = vector.broadcast %cst_16 : f32 to vector<2x8xf32>
    %29 = arith.addf %28, %27 : vector<2x8xf32>
    %30 = arith.divf %28, %29 : vector<2x8xf32>
    %31 = arith.mulf %25, %30 : vector<2x8xf32>
    %c0_17 = arith.constant 0 : index
    %c0_18 = arith.constant 0 : index
    %32 = vector.load %arg4[%c0_17, %c0_18] : memref<8x4xf32, #tpu.memory_space<vmem>>, vector<8x4xf32>
    %cst_19 = arith.constant dense<0.000000e+00> : vector<2x4xf32>
    %33 = tpu.matmul %31, %32, %cst_19 {dimension_numbers = #tpu.dot_dimension_numbers<[1], [0], [0], [1], [0, 0, 1, 1], [], []>} : vector<2x8xf32>, vector<8x4xf32>, vector<2x4xf32> -> vector<2x4xf32>
    %c0_20 = arith.constant 0 : index
    %c0_21 = arith.constant 0 : index
    %34 = vector.load %arg5[%c0_20, %c0_21] : memref<1x4xf32, #tpu.memory_space<vmem>>, vector<1x4xf32>
    %35 = vector.broadcast %34 : vector<1x4xf32> to vector<2x4xf32>
    %36 = arith.addf %33, %35 : vector<2x4xf32>
    %37 = arith.negf %36 : vector<2x4xf32>
    %38 = math.exp %37 : vector<2x4xf32>
    %cst_22 = arith.constant 1.000000e+00 : f32
    %39 = vector.broadcast %cst_22 : f32 to vector<2x4xf32>
    %40 = arith.addf %39, %38 : vector<2x4xf32>
    %41 = arith.divf %39, %40 : vector<2x4xf32>
    %c0_23 = arith.constant 0 : index
    %c0_24 = arith.constant 0 : index
    %42 = vector.load %arg1[%c0_23, %c0_24] : memref<2x1024xf32, #tpu.memory_space<vmem>>, vector<2x256xf32>
    %43 = vector.extract_strided_slice %41 {offsets = [0, 0], sizes = [2, 1], strides = [1, 1]} : vector<2x4xf32> to vector<2x1xf32>
    %44 = vector.broadcast %43 : vector<2x1xf32> to vector<2x256xf32>
    %45 = arith.mulf %42, %44 : vector<2x256xf32>
    %c0_25 = arith.constant 0 : index
    %c0_26 = arith.constant 0 : index
    %46 = vector.load %arg6[%c0_25, %c0_26] : memref<2x1024xf32, #tpu.memory_space<vmem>>, vector<2x256xf32>
    tpu.vector_store %arg6[%c0_25, %c0_26], %45 {strides = array<i32>} : memref<2x1024xf32, #tpu.memory_space<vmem>>, vector<2x256xf32>,
    %c0_27 = arith.constant 0 : index
    %c256_28 = arith.constant 256 : index
    %47 = vector.load %arg1[%c0_27, %c256_28] : memref<2x1024xf32, #tpu.memory_space<vmem>>, vector<2x256xf32>
    %48 = vector.extract_strided_slice %41 {offsets = [0, 1], sizes = [2, 1], strides = [1, 1]} : vector<2x4xf32> to vector<2x1xf32>
    %49 = vector.broadcast %48 : vector<2x1xf32> to vector<2x256xf32>
    %50 = arith.mulf %47, %49 : vector<2x256xf32>
    %c0_29 = arith.constant 0 : index
    %c256_30 = arith.constant 256 : index
    %51 = vector.load %arg6[%c0_29, %c256_30] : memref<2x1024xf32, #tpu.memory_space<vmem>>, vector<2x256xf32>
    tpu.vector_store %arg6[%c0_29, %c256_30], %50 {strides = array<i32>} : memref<2x1024xf32, #tpu.memory_space<vmem>>, vector<2x256xf32>,
    %c0_31 = arith.constant 0 : index
    %c512_32 = arith.constant 512 : index
    %52 = vector.load %arg1[%c0_31, %c512_32] : memref<2x1024xf32, #tpu.memory_space<vmem>>, vector<2x256xf32>
    %53 = vector.extract_strided_slice %41 {offsets = [0, 2], sizes = [2, 1], strides = [1, 1]} : vector<2x4xf32> to vector<2x1xf32>
    %54 = vector.broadcast %53 : vector<2x1xf32> to vector<2x256xf32>
    %55 = arith.mulf %52, %54 : vector<2x256xf32>
    %c0_33 = arith.constant 0 : index
    %c512_34 = arith.constant 512 : index
    %56 = vector.load %arg6[%c0_33, %c512_34] : memref<2x1024xf32, #tpu.memory_space<vmem>>, vector<2x256xf32>
    tpu.vector_store %arg6[%c0_33, %c512_34], %55 {strides = array<i32>} : memref<2x1024xf32, #tpu.memory_space<vmem>>, vector<2x256xf32>,
    %c0_35 = arith.constant 0 : index
    %c768_36 = arith.constant 768 : index
    %57 = vector.load %arg1[%c0_35, %c768_36] : memref<2x1024xf32, #tpu.memory_space<vmem>>, vector<2x256xf32>
    %58 = vector.extract_strided_slice %41 {offsets = [0, 3], sizes = [2, 1], strides = [1, 1]} : vector<2x4xf32> to vector<2x1xf32>
    %59 = vector.broadcast %58 : vector<2x1xf32> to vector<2x256xf32>
    %60 = arith.mulf %57, %59 : vector<2x256xf32>
    %c0_37 = arith.constant 0 : index
    %c768_38 = arith.constant 768 : index
    %61 = vector.load %arg6[%c0_37, %c768_38] : memref<2x1024xf32, #tpu.memory_space<vmem>>, vector<2x256xf32>
    tpu.vector_store %arg6[%c0_37, %c768_38], %60 {strides = array<i32>} : memref<2x1024xf32, #tpu.memory_space<vmem>>, vector<2x256xf32>,
    return
  }
  func.func @transform_0(%arg0: i32) -> (i32, i32) {
    %c0_i32 = arith.constant 0 : i32
    %c0_i32_0 = arith.constant 0 : i32
    return %arg0, %c0_i32 : i32, i32
  }
  func.func @transform_1(%arg0: i32) -> (i32, i32) {
    %c0_i32 = arith.constant 0 : i32
    %c0_i32_0 = arith.constant 0 : i32
    %c0_i32_1 = arith.constant 0 : i32
    return %c0_i32, %c0_i32_0 : i32, i32
  }
  func.func @transform_2(%arg0: i32) -> (i32, i32) {
    %c0_i32 = arith.constant 0 : i32
    %c0_i32_0 = arith.constant 0 : i32
    %c0_i32_1 = arith.constant 0 : i32
    return %c0_i32, %c0_i32_0 : i32, i32
  }
  func.func @transform_3(%arg0: i32) -> (i32, i32) {
    %c0_i32 = arith.constant 0 : i32
    %c0_i32_0 = arith.constant 0 : i32
    %c0_i32_1 = arith.constant 0 : i32
    return %c0_i32, %c0_i32_0 : i32, i32
  }
  func.func @transform_4(%arg0: i32) -> (i32, i32) {
    %c0_i32 = arith.constant 0 : i32
    %c0_i32_0 = arith.constant 0 : i32
    %c0_i32_1 = arith.constant 0 : i32
    return %c0_i32, %c0_i32_0 : i32, i32
  }
  func.func @transform_5(%arg0: i32) -> (i32, i32) {
    %c0_i32 = arith.constant 0 : i32
    %c0_i32_0 = arith.constant 0 : i32
    return %arg0, %c0_i32 : i32, i32
  }
}

</mosaic_0001>

<bundles_post_ra>
// kernel: se_forward.1
= control target key start
LH: loop header
LB: loop body
LE: loop exit
PB: predicated region body
PF: predicated region fallthrough
CT: control target
= control target key end

     0   :  { %vm27_vm0 = vcmask 1041408   ;;  %v263_v24 = vmov 256.0   ;;  %vm95_vm1 = vcmask 1043456   ;;  %vm80_vm3 = vcmask 7168   ;;  %s356_s0 = inlined_call_operand.vmem [shape: f32[2,1024], index: 0, kind: input, shape index: {}]   ;;  %s357_s2 = inlined_call_operand.vmem [shape: f32[1,8], index: 2, kind: input, shape index: {}]   ;;  %s358_s1 = inlined_call_operand.vmem [shape: f32[4,8], index: 1, kind: input, shape index: {}]   ;;  %s359_s4 = inlined_call_operand.vmem [shape: f32[1,4], index: 4, kind: input, shape index: {}]   ;;  %s360_s3 = inlined_call_operand.vmem [shape: f32[8,4], index: 3, kind: input, shape index: {}]   ;;  %s361_s5 = inlined_call_operand.vmem [shape: f32[2,1024], index: 5, kind: output, shape index: {}]  }
   0x1   :  { %v302_v0 = vld [vmem:[%s356_s0] sm:$0xf]  ;;  %v41_v1 = vld [vmem:[%s356_s0 + $0x4] sm:$0xf]  ;;  %v54_v7 = vld [vmem:[%s356_s0 + $0x8] sm:$0xf]  ;;  %253 = vrcp.f32 %v263_v24 }
   0x2   :  { %22 = vst [vmem:[#allocation1] ss:$4 sm:$0xff] %v302_v0  ;;  %v67_v13 = vld [vmem:[%s356_s0 + $0xc] sm:$0xf]  ;;  %v86_v25 = vld [vmem:[%s358_s1] sm:$0xf] }
   0x3   :  { %235 = vmatpush.msk.msra.mxu0 %vm95_vm1, %v86_v25  ;;  %vm82_vm4 = vcmask 15360   ;;  %vm84_vm5 = vcmask 23552   ;;  %vm91_vm6 = vcmask 31744   ;;  %v251_v43 = vld [vmem:[%s357_s2] ss:$0 sm:$0xff]  ;;  %vm144_vm11 = vcmask 64512  }
   0x4   :  { %v139_v44 = vld [vmem:[%s360_s3] sm:$0xff]  ;;  %v264_v61 = vmov 3   ;;  %v265_v62 = vmov 2   ;;  %v266_v63 = vmov 0  }
   0x5   :  { %163 = vmatpush.msra.mxu1 %v139_v44  ;;  %249 = vset.pattern.permute.xlu1 %v264_v61  ;;  %v198_v24 = vld [vmem:[%s356_s0 + $0x4] sm:$0xf] }
   0x6   :  { %248 = vset.pattern.permute.xlu0 %v265_v62  ;;  %246 = vset.pattern.permute.xlu2 %v266_v63 }
   0x7   :  { %v254_v26 = vpop.eup %253 }
   0x8   :  { %v34_v27 = vmul.f32 256.0, %v254_v26  ;;  %vm38_vm2 = vweird.f32 %v254_v26 }
   0x9   :  { %v23_v2 = vld.sshfl [vmem:[#allocation1] sm:$0xff pattern:$0x73625140]  ;;  %v24_v3 = vld.sshfl [vmem:[#allocation1 + $0x8] sm:$0xff pattern:$0x73625140] }
   0xa   :  { %v28_v4 = vsel %vm27_vm0, %v23_v2, 0.0  ;;  %v29_v5 = vsel %vm27_vm0, %v24_v3, 0.0  ;;  %43 = vst [vmem:[#allocation1] ss:$4 sm:$0xff] %v41_v1  ;;  %v35_v28 = vsub.f32 1.0, %v34_v27 }
   0xb   :  { %v30_v6 = vadd.f32 %v29_v5, %v28_v4  ;;  %v252_v1 = vld [vmem:[%s359_s4] ss:$0 sm:$0xff] }
   0xc   :  { %v36_v30 = vmul.f32 %v254_v26, %v35_v28  ;;  %v220_v28 = vld [vmem:[%s356_s0 + $0xc] sm:$0xf] }
   0xd   :  { %31 = vadd.xlane.f32.xlu0 %v30_v6 }
   0xe   :  { %v37_v31 = vadd.f32 %v254_v26, %v36_v30 }
  0x10   :  { %v39_v32 = vsel %vm38_vm2, %v254_v26, %v37_v31 }
  0x11   :  { %v44_v8 = vld.sshfl [vmem:[#allocation1] sm:$0xff pattern:$0x73625140]  ;;  %v45_v9 = vld.sshfl [vmem:[#allocation1 + $0x8] sm:$0xff pattern:$0x73625140] }
  0x12   :  { %v48_v10 = vsel %vm27_vm0, %v44_v8, 0.0  ;;  %v49_v11 = vsel %vm27_vm0, %v45_v9, 0.0  ;;  %56 = vst [vmem:[#allocation1] ss:$4 sm:$0xff] %v54_v7 }
  0x13   :  { %v50_v12 = vadd.f32 %v49_v11, %v48_v10 }
  0x15   :  { %51 = vadd.xlane.f32.xlu0 %v50_v12 }
  0x19   :  { %v57_v14 = vld.sshfl [vmem:[#allocation1] sm:$0xff pattern:$0x73625140]  ;;  %v58_v15 = vld.sshfl [vmem:[#allocation1 + $0x8] sm:$0xff pattern:$0x73625140] }
  0x1a   :  { %v61_v16 = vsel %vm27_vm0, %v57_v14, 0.0  ;;  %v62_v17 = vsel %vm27_vm0, %v58_v15, 0.0  ;;  %69 = vst [vmem:[#allocation1] ss:$4 sm:$0xff] %v67_v13 }
  0x1b   :  { %v63_v18 = vadd.f32 %v62_v17, %v61_v16  ;;  %v267_v17 = vmov 1  }
  0x1d   :  { %64 = vadd.xlane.f32.xlu1 %v63_v18  ;;  %v268_v18 = vmov 269488144  }
  0x21   :  { %v70_v19 = vld.sshfl [vmem:[#allocation1] sm:$0xff pattern:$0x73625140]  ;;  %v71_v20 = vld.sshfl [vmem:[#allocation1 + $0x8] sm:$0xff pattern:$0x73625140] }
  0x22   :  { %v74_v21 = vsel %vm27_vm0, %v70_v19, 0.0  ;;  %v75_v22 = vsel %vm27_vm0, %v71_v20, 0.0  ;;  %v192_v19 = vunpack.c.l.s4 %v268_v18 }
  0x23   :  { %v76_v23 = vadd.f32 %v75_v22, %v74_v21 }
  0x24   :  { %v193_v20 = vunpack.c.0.s8 %v192_v19 }
  0x25   :  { %77 = vadd.xlane.f32.xlu1 %v76_v23 }
  0x80   :  { %v32_v29 = vpop.xlane.xlu0 %31 }
  0x81   :  { %v40_v35 = vmul.f32 %v39_v32, %v32_v29  ;;  %v209_v29 = vld [vmem:[%s356_s0 + $0x8] sm:$0xf] }
  0x88   :  { %v52_v33 = vpop.xlane.xlu0 %51 }
  0x89   :  { %v53_v36 = vmul.f32 %v52_v33, %v39_v32 }
  0x8b   :  { %v81_v38 = vsel %vm80_vm3, %v40_v35, %v53_v36 }
  0x90   :  { %v65_v34 = vpop.xlane.xlu1 %64 }
  0x91   :  { %v66_v37 = vmul.f32 %v65_v34, %v39_v32 }
  0x93   :  { %v83_v41 = vsel %vm82_vm4, %v81_v38, %v66_v37 }
  0x98   :  { %v78_v39 = vpop.xlane.xlu1 %77 }
  0x99   :  { %v79_v40 = vmul.f32 %v78_v39, %v39_v32 }
  0x9b   :  { %v85_v42 = vsel %vm84_vm5, %v83_v41, %v79_v40 }
  0x9c   :  { %236 = vmatmul.msk.f32.vlgmr.msra.gmra.mxu0 %vm91_vm6, %v85_v42 }
 0x119   :  { %v116_v45 = vpop.f32.mrf.mxu0 }
 0x11a   :  { %v117_v46 = vadd.f32 %v251_v43, %v116_v45 }
 0x11c   :  { %v237_v47 = vmul.f32 -1.442695, %v117_v46 }
 0x11e   :  { %255 = vpow2.f32 %v237_v47 }
 0x124   :  { %v256_v48 = vpop.eup %255 }
 0x125   :  { %v122_v49 = vadd.f32 1.0, %v256_v48 }
 0x127   :  { %257 = vrcp.f32 %v122_v49  ;;  %v134_v53 = vand.u32 2147483648, %v122_v49  ;;  %v132_v55 = vand.u32 2147483647, %v122_v49  ;;  %vm128_vm8 = vweird.f32 %v122_v49 }
 0x129   :  { %v135_v57 = vor.u32 1.1754944e-38, %v134_v53  ;;  %vm133_vm10 = vcmp.eq.f32.partialorder %v132_v55, 8.507059e+37 }
 0x12d   :  { %v258_v50 = vpop.eup %257 }
 0x12e   :  { %v124_v51 = vmul.f32 %v258_v50, %v122_v49  ;;  %vm129_vm7 = vweird.f32 %v258_v50 }
 0x12f   :  { %vm130_vm9 = vmor %vm128_vm8, %vm129_vm7 }
 0x130   :  { %v125_v52 = vsub.f32 1.0, %v124_v51 }
 0x132   :  { %v126_v54 = vmul.f32 %v258_v50, %v125_v52 }
 0x134   :  { %v127_v56 = vadd.f32 %v258_v50, %v126_v54 }
 0x136   :  { %v131_v58 = vsel %vm130_vm9, %v258_v50, %v127_v56 }
 0x137   :  { %v136_v59 = vsel %vm133_vm10, %v135_v57, %v131_v58 }
 0x138   :  { %v138_v60 = vmul.f32 %v136_v59, %v117_v46 }
 0x13a   :  { %238 = vmatmul.msk.f32.vlgmr.msra.gmra.mxu1 %vm144_vm11, %v138_v60 }
 0x1b7   :  { %v165_v2 = vpop.f32.mrf.mxu1 }
 0x1b8   :  { %v166_v3 = vadd.f32 %v252_v1, %v165_v2 }
 0x1ba   :  { %v239_v4 = vmul.f32 -1.442695, %v166_v3 }
 0x1bc   :  { %259 = vpow2.f32 %v239_v4 }
 0x1c2   :  { %v260_v5 = vpop.eup %259 }
 0x1c3   :  { %v171_v6 = vadd.f32 1.0, %v260_v5 }
 0x1c5   :  { %261 = vrcp.f32 %v171_v6  ;;  %v183_v10 = vand.u32 2147483648, %v171_v6  ;;  %v181_v12 = vand.u32 2147483647, %v171_v6  ;;  %vm177_vm13 = vweird.f32 %v171_v6 }
 0x1c7   :  { %v184_v14 = vor.u32 1.1754944e-38, %v183_v10  ;;  %vm182_vm15 = vcmp.eq.f32.partialorder %v181_v12, 8.507059e+37 }
 0x1cb   :  { %v262_v7 = vpop.eup %261 }
 0x1cc   :  { %v173_v8 = vmul.f32 %v262_v7, %v171_v6  ;;  %vm178_vm12 = vweird.f32 %v262_v7 }
 0x1cd   :  { %vm179_vm14 = vmor %vm177_vm13, %vm178_vm12 }
 0x1ce   :  { %v174_v9 = vsub.f32 1.0, %v173_v8 }
 0x1d0   :  { %v175_v11 = vmul.f32 %v262_v7, %v174_v9 }
 0x1d2   :  { %v176_v13 = vadd.f32 %v262_v7, %v175_v11 }
 0x1d4   :  { %v180_v15 = vsel %vm179_vm14, %v262_v7, %v176_v13 }
 0x1d5   :  { %v185_v16 = vsel %vm182_vm15, %v184_v14, %v180_v15 }
 0x1d6   :  { %222 = vperm.xlu1 %249, %v185_v16   ;;  %211 = vperm.xlu0 %248, %v185_v16  }
 0x1d7   :  { %189 = vperm.xlu2 %246, %v185_v16  }
 0x1de   :  { %250 = vset.pattern.permute.xlu0 %v264_v61 }
 0x1df   :  { %247 = vset.pattern.permute.xlu2 %v267_v17 }
 0x1e0   :  { %200 = vperm.xlu2 %247, %v185_v16  }
 0x231   :  { %v190_v21 = vpop.permute.xlu2 %189 }
 0x232   :  { %v194_v22 = vperm.slane %v190_v21, %v193_v20 }
 0x234   :  { %v196_v23 = vmul.f32 %v194_v22, %v302_v0 }
 0x236   :  { %197 = vst [vmem:[%s361_s5] sm:$0xf] %v196_v23 }
 0x23a   :  { %v201_v25 = vpop.permute.xlu2 %200 }
 0x23b   :  { %v205_v26 = vperm.slane %v201_v25, %v193_v20 }
 0x23d   :  { %v207_v27 = vmul.f32 %v205_v26, %v198_v24 }
 0x23f   :  { %208 = vst [vmem:[%s361_s5 + $0x4] sm:$0xf] %v207_v27 }
 0x248   :  { %v223_v0 = vpop.permute.xlu1 %222  ;;  %v212_v30 = vpop.permute.xlu0 %211 }
 0x249   :  { %v227_v31 = vperm.slane %v223_v0, %v193_v20  ;;  %v216_v32 = vperm.slane %v212_v30, %v193_v20 }
 0x24b   :  { %v229_v33 = vmul.f32 %v227_v31, %v220_v28  ;;  %v218_v34 = vmul.f32 %v216_v32, %v209_v29 }
 0x24d   :  { %230 = vst [vmem:[%s361_s5 + $0xc] sm:$0xf] %v229_v33 }
 0x24e   :  { %219 = vst [vmem:[%s361_s5 + $0x8] sm:$0xf] %v218_v34 }

</bundles_post_ra>
